<compile_context>
chip_gen: v7x
topology: tpu7x:2x2x1
jax: 0.10.0
libtpu: 0.0.40
codegen_flags: <defaults>
</compile_context>

<pallas_src>
import numpy as np
import jax
import jax.numpy as jnp
from jax.experimental import pallas as pl
from jax.experimental.pallas import tpu as pltpu

EMBED = 4
HEADS = 1          # head_dim == EMBED // HEADS == EMBED

LANE = 128         # TPU lane width
SUB = 8            # f32 sublane tile

# Constant-slab row offsets (all multiples of 8 -> tile-aligned static ref slices).
_WQ_OFF = 0        # 128 rows: [[Wq, 0], [bq, 0]] for the 128-lane augmented query input
_WKV_OFF = 128     # 128 rows: block-diag [[Wk, 0], [0, Wv]] + bias row (fused K|V projection)
_WO_OFF = 256      # 128 rows: rows E..2E-1 hold Wo (V lanes), everything else zero
_MASK_OFF = 384    # 8 rows:   mask tiled across the S strided batches, 1.0 elsewhere
_BO_OFF = 392      # 8 rows:   row 0 holds bo
_SLAB_ROWS = 400


def _round_up(x, m):
    return ((x + m - 1) // m) * m


def pack_attention_constants(params, mask, *, num_strides, query_len, key_len, embed_size):
    """Pack weights, biases and the mask into ONE lane-dense (400, 128) f32 slab.

    Called ONCE at parameter-init time (hoisted out of the forward hot path). The forward
    then ships exactly three operands: q_aug, kv_aug and this cached slab.
    """
    E, S, Lq, Lk = embed_size, num_strides, query_len, key_len
    assert 2 * E + 1 <= LANE and Lq <= SUB and S * Lk <= LANE
    wq, bq, wk, bk, wv, bv, wo, bo = [np.asarray(p, np.float32) for p in params]
    m = np.broadcast_to(np.asarray(mask, np.float32), (Lq, Lk))

    slab = np.zeros((_SLAB_ROWS, LANE), np.float32)
    # q_aug(·,128) @ slab[WQ] -> cols[:E] = q @ Wq + bq  (bias folded via the ones column)
    slab[_WQ_OFF:_WQ_OFF + E, :E] = wq
    slab[_WQ_OFF + E, :E] = bq
    # kv_aug(·,128) @ slab[WKV] -> cols[:E] = K_proj, cols[E:2E] = V_proj (one fused matmul)
    slab[_WKV_OFF:_WKV_OFF + E, :E] = wk
    slab[_WKV_OFF + E:_WKV_OFF + 2 * E, E:2 * E] = wv
    slab[_WKV_OFF + 2 * E, :E] = bk
    slab[_WKV_OFF + 2 * E, E:2 * E] = bv
    # (attn @ [K_proj | V_proj]) @ slab[WO] == (attn @ V_proj) @ Wo  (K lanes hit zero rows)
    slab[_WO_OFF + E:_WO_OFF + 2 * E, :E] = wo
    # mask tiled per strided batch; 1.0 everywhere else so padded cols are never masked
    slab[_MASK_OFF:_MASK_OFF + SUB, :] = 1.0
    for s in range(S):
        slab[_MASK_OFF:_MASK_OFF + Lq, s * Lk:(s + 1) * Lk] = m
    # output bias row
    slab[_BO_OFF, :E] = bo
    return jnp.asarray(slab)


def _make_kernel(*, embed_size, num_strides, query_len, key_len):
    E, S, Lq, Lk = embed_size, num_strides, query_len, key_len
    inv_scale = 1.0 / float(embed_size) ** 0.5   # PyTorch scales by sqrt(embed_size)
    # TODO(synk): if heads > 1 were supported, the scale must become 1/sqrt(head_dim).

    def kernel(q_ref, kv_ref, slab_ref, out_ref):
        """q_ref:(8,128)  kv_ref:(S*Lk padded,128)  slab_ref:(400,128)  out_ref:(S,8,128)."""
        lq_pad = q_ref.shape[0]
        slk = kv_ref.shape[0]

        # Tile-aligned static slices of the single constant slab (one DMA for everything).
        wq = slab_ref[_WQ_OFF:_WQ_OFF + LANE, :]
        wkv = slab_ref[_WKV_OFF:_WKV_OFF + LANE, :]
        wo = slab_ref[_WO_OFF:_WO_OFF + LANE, :]
        bo = slab_ref[_BO_OFF:_BO_OFF + 1, :]
        mask_t = slab_ref[_MASK_OFF:_MASK_OFF + lq_pad, :]

        # Projections: one MXU push each; all S strided K|V batches fused in one matmul.
        q_p = jnp.dot(q_ref[...], wq, preferred_element_type=jnp.float32)      # (8, 128)
        kv_p = jnp.dot(kv_ref[...], wkv, preferred_element_type=jnp.float32)   # (S*Lk, 128)

        # Energies for every strided batch in ONE push: (Lq_pad, S*Lk). The zero V lanes of
        # q_p contribute nothing, so contracting all 128 lanes equals Q_proj . K_proj.
        energy = jax.lax.dot_general(q_p, kv_p, (((1,), (1,)), ((), ())),
                                     preferred_element_type=jnp.float32)
        energy = jnp.where(mask_t[:, :slk] == 0.0, jnp.float32(-1e20), energy)
        scaled = energy * jnp.float32(inv_scale)

        # Short static unroll over the strided batches (S == 2 here).
        # TODO(synk): for S > ~4 switch to lax.fori_loop(..., unroll=True) to bound vreg pressure.
        for s in range(S):
            e_s = scaled[:, s * Lk:(s + 1) * Lk]
            e_s = e_s - jnp.max(e_s, axis=-1, keepdims=True)
            p = jnp.exp(e_s)
            attn = p / jnp.sum(p, axis=-1, keepdims=True)   # exact divide: kernel is DMA-bound
            weighted = jnp.dot(attn, kv_p[s * Lk:(s + 1) * Lk, :],
                               preferred_element_type=jnp.float32)              # (8, 128)
            out_ref[s] = (jnp.dot(weighted, wo, preferred_element_type=jnp.float32) + bo)

    return kernel


def self_attention_forward(values, keys, query, token_index, stride_tokens_index, const_slab):
    """Forward pass. `const_slab` comes from pack_attention_constants (built once, cached)."""
    N, Lq, E = query.shape
    Lk = keys.shape[1]
    S = len(stride_tokens_index)
    assert S * Lq == N, "reshape(N, 1, E) in the reference forward requires S * Lq == N"
    assert HEADS == 1

    f32 = jnp.float32
    stride_idx = jnp.asarray(stride_tokens_index, jnp.int32)
    lq_pad = _round_up(max(Lq, SUB), SUB)
    slk_pad = _round_up(max(S * Lk, SUB), SUB)

    # Per-call operands, lane-padded to 128 so every kernel load is a full unmasked tile.
    # TODO(synk): at scale, gather these rows inside the kernel via scalar-prefetched indices
    #             instead of XLA gathers that materialize extra HBM copies.
    q_sel = query[token_index]                                                # (Lq, E)
    q_aug = (jnp.zeros((lq_pad, LANE), f32)
             .at[:Lq, :E].set(q_sel)
             .at[:Lq, E].set(1.0))                                            # ones col folds bq
    k_sel = keys[stride_idx].reshape(S * Lk, E)
    v_sel = values[stride_idx].reshape(S * Lk, E)
    kv_aug = (jnp.zeros((slk_pad, LANE), f32)
              .at[:S * Lk, :E].set(k_sel)
              .at[:S * Lk, E:2 * E].set(v_sel)
              .at[:S * Lk, 2 * E].set(1.0))                                   # ones col folds bk/bv

    kernel = _make_kernel(embed_size=E, num_strides=S, query_len=Lq, key_len=Lk)

    flops = (2 * lq_pad * LANE * LANE                 # Q projection
             + 2 * slk_pad * LANE * LANE              # fused K|V projection (all S batches)
             + 2 * lq_pad * slk_pad * LANE            # energies
             + S * (2 * lq_pad * Lk * LANE            # attn @ [K|V]
                    + 2 * lq_pad * LANE * LANE))      # output projection
    bytes_accessed = 4 * (q_aug.size + kv_aug.size + const_slab.size + S * lq_pad * LANE)

    vmem = pl.BlockSpec(memory_space=pltpu.MemorySpace.VMEM)
    out_padded = pl.pallas_call(
        kernel,
        out_shape=jax.ShapeDtypeStruct((S, lq_pad, LANE), f32),
        in_specs=[vmem, vmem, vmem],
        out_specs=vmem,
        cost_estimate=pl.CostEstimate(flops=flops,
                                      transcendentals=S * lq_pad * Lk,
                                      bytes_accessed=bytes_accessed),
    )(q_aug, kv_aug, const_slab)

    # (S, Lq_pad, 128) -> (N, E): drop padding; matches reshape(N,1,E) + fc_out + squeeze(1).
    return out_padded[:, :Lq, :E].reshape(N, E)


def _reference_forward(values, keys, query, mask, token_index, stride_idx, params):
    """Pure-JAX replica of the PyTorch forward (correctness check)."""
    wq, bq, wk, bk, wv, bv, wo, bo = params
    N, Lq, E = query.shape
    h, d = HEADS, E // HEADS
    stride_idx = jnp.asarray(stride_idx)
    v = (values @ wv + bv).reshape(N, -1, h, d)[stride_idx]
    k = (keys @ wk + bk).reshape(N, -1, h, d)[stride_idx]
    q = (query @ wq + bq).reshape(N, -1, h, d)[token_index]          # (Lq, h, d)
    energy = jnp.einsum('qhd,nkhd->nhqk', q, k)                      # q broadcast over n
    energy = jnp.where(mask == 0.0, -1e20, energy)
    attn = jax.nn.softmax(energy / (E ** 0.5), axis=3)
    wv_out = jnp.einsum('nhql,nlhd->nqhd', attn, v)
    out = wv_out.reshape(N, 1, h * d) @ wo + bo
    return out.squeeze(1)


def _init_params(key, e):
    ks = jax.random.split(key, 8)
    scale = 1.0 / np.sqrt(e)
    mk = lambda k, shape: jax.random.uniform(k, shape, jnp.float32, -scale, scale)
    return (mk(ks[0], (e, e)), mk(ks[1], (e,)),   # Wq, bq
            mk(ks[2], (e, e)), mk(ks[3], (e,)),   # Wk, bk
            mk(ks[4], (e, e)), mk(ks[5], (e,)),   # Wv, bv
            mk(ks[6], (e, e)), mk(ks[7], (e,)))   # Wo, bo


if __name__ == "__main__":
    key = jax.random.PRNGKey(0)
    k_v, k_k, k_q, k_p = jax.random.split(key, 4)

    N, L, E = 8, 4, EMBED            # S * Lq == N  (2 * 4 == 8)
    stride_tokens_index = [0, 2]
    token_index = 3

    # Snap test data/params to bf16-representable f32 so the correctness check does not depend
    # on the MXU's f32 pass count (DEFAULT vs HIGHEST) in either the kernel or the reference.
    snap = lambda x: jnp.asarray(x, jnp.float32).astype(jnp.bfloat16).astype(jnp.float32)
    values = snap(jax.random.normal(k_v, (N, L, E), jnp.float32))
    keys = snap(jax.random.normal(k_k, (N, L, E), jnp.float32))
    query = snap(jax.random.normal(k_q, (N, L, E), jnp.float32))
    mask = jnp.ones((L, L), jnp.float32)          # broadcast against (S, H, Lq, Lk) like PyTorch
    params = tuple(snap(p) for p in _init_params(k_p, E))

    # Weight/bias/mask packing is done ONCE here (cached), not per forward call.
    const_slab = pack_attention_constants(params, mask, num_strides=len(stride_tokens_index),
                                          query_len=L, key_len=L, embed_size=E)

    out = self_attention_forward(values, keys, query, token_index,
                                 stride_tokens_index, const_slab)
    out = jax.block_until_ready(out)

    ref = _reference_forward(values, keys, query, mask,
                             token_index, stride_tokens_index, params)
    np.testing.assert_allclose(np.asarray(out), np.asarray(ref), rtol=1e-5, atol=1e-5)

    print("KERNEL_OK")
</pallas_src>

<mosaic_0001>
module attributes {stable_mosaic.version = 11 : i64} {
  func.func @kernel(%arg0: memref<8x128xf32, #tpu.memory_space<vmem>>, %arg1: memref<8x128xf32, #tpu.memory_space<vmem>>, %arg2: memref<400x128xf32, #tpu.memory_space<vmem>>, %arg3: memref<2x8x128xf32, #tpu.memory_space<vmem>>) attributes {dimension_semantics = [], scalar_prefetch = 0 : i64, scratch_operands = 0 : i64, tpu.core_type = #tpu.core_type<tc>} {
    %c0 = arith.constant 0 : index
    %c0_0 = arith.constant 0 : index
    %0 = vector.load %arg2[%c0, %c0_0] : memref<400x128xf32, #tpu.memory_space<vmem>>, vector<128x128xf32>
    %c128 = arith.constant 128 : index
    %c0_1 = arith.constant 0 : index
    %1 = vector.load %arg2[%c128, %c0_1] : memref<400x128xf32, #tpu.memory_space<vmem>>, vector<128x128xf32>
    %c256 = arith.constant 256 : index
    %c0_2 = arith.constant 0 : index
    %2 = vector.load %arg2[%c256, %c0_2] : memref<400x128xf32, #tpu.memory_space<vmem>>, vector<128x128xf32>
    %c392 = arith.constant 392 : index
    %c0_3 = arith.constant 0 : index
    %3 = vector.load %arg2[%c392, %c0_3] : memref<400x128xf32, #tpu.memory_space<vmem>>, vector<1x128xf32>
    %c384 = arith.constant 384 : index
    %c0_4 = arith.constant 0 : index
    %4 = vector.load %arg2[%c384, %c0_4] : memref<400x128xf32, #tpu.memory_space<vmem>>, vector<8x128xf32>
    %c0_5 = arith.constant 0 : index
    %c0_6 = arith.constant 0 : index
    %5 = vector.load %arg0[%c0_5, %c0_6] : memref<8x128xf32, #tpu.memory_space<vmem>>, vector<8x128xf32>
    %cst = arith.constant dense<0.000000e+00> : vector<8x128xf32>
    %6 = tpu.matmul %5, %0, %cst {dimension_numbers = #tpu.dot_dimension_numbers<[1], [0], [0], [1], [0, 0, 1, 1], [], []>} : vector<8x128xf32>, vector<128x128xf32>, vector<8x128xf32> -> vector<8x128xf32>
    %c0_7 = arith.constant 0 : index
    %c0_8 = arith.constant 0 : index
    %7 = vector.load %arg1[%c0_7, %c0_8] : memref<8x128xf32, #tpu.memory_space<vmem>>, vector<8x128xf32>
    %cst_9 = arith.constant dense<0.000000e+00> : vector<8x128xf32>
    %8 = tpu.matmul %7, %1, %cst_9 {dimension_numbers = #tpu.dot_dimension_numbers<[1], [0], [0], [1], [0, 0, 1, 1], [], []>} : vector<8x128xf32>, vector<128x128xf32>, vector<8x128xf32> -> vector<8x128xf32>
    %cst_10 = arith.constant dense<0.000000e+00> : vector<8x8xf32>
    %9 = tpu.matmul %6, %8, %cst_10 {dimension_numbers = #tpu.dot_dimension_numbers<[1], [1], [0], [0], [0, 0, 1, 0], [], []>} : vector<8x128xf32>, vector<8x128xf32>, vector<8x8xf32> -> vector<8x8xf32>
    %10 = vector.extract_strided_slice %4 {offsets = [0, 0], sizes = [8, 8], strides = [1, 1]} : vector<8x128xf32> to vector<8x8xf32>
    %cst_11 = arith.constant 0.000000e+00 : f32
    %11 = vector.broadcast %cst_11 : f32 to vector<8x8xf32>
    %12 = arith.cmpf oeq, %10, %11 : vector<8x8xf32>
    %cst_12 = arith.constant -1.000000e+20 : f32
    %13 = vector.broadcast %cst_12 : f32 to vector<8x8xf32>
    %14 = arith.select %12, %13, %9 : vector<8x8xi1>, vector<8x8xf32>
    %cst_13 = arith.constant 5.000000e-01 : f32
    %15 = vector.broadcast %cst_13 : f32 to vector<8x8xf32>
    %16 = arith.mulf %14, %15 : vector<8x8xf32>
    %17 = vector.extract_strided_slice %16 {offsets = [0, 0], sizes = [8, 4], strides = [1, 1]} : vector<8x8xf32> to vector<8x4xf32>
    %cst_14 = arith.constant dense<0xFF800000> : vector<8xf32>
    %18 = vector.multi_reduction <maximumf>, %17, %cst_14 [1] : vector<8x4xf32> to vector<8xf32>
    %19 = vector.shape_cast %18 : vector<8xf32> to vector<8x1xf32>
    %20 = vector.broadcast %19 : vector<8x1xf32> to vector<8x4xf32>
    %21 = arith.subf %17, %20 : vector<8x4xf32>
    %22 = math.exp %21 : vector<8x4xf32>
    %cst_15 = arith.constant dense<0.000000e+00> : vector<8xf32>
    %23 = vector.multi_reduction <add>, %22, %cst_15 [1] : vector<8x4xf32> to vector<8xf32>
    %24 = vector.shape_cast %23 : vector<8xf32> to vector<8x1xf32>
    %25 = vector.broadcast %24 : vector<8x1xf32> to vector<8x4xf32>
    %26 = arith.divf %22, %25 : vector<8x4xf32>
    %27 = vector.extract_strided_slice %8 {offsets = [0, 0], sizes = [4, 128], strides = [1, 1]} : vector<8x128xf32> to vector<4x128xf32>
    %cst_16 = arith.constant dense<0.000000e+00> : vector<8x128xf32>
    %28 = tpu.matmul %26, %27, %cst_16 {dimension_numbers = #tpu.dot_dimension_numbers<[1], [0], [0], [1], [0, 0, 1, 1], [], []>} : vector<8x4xf32>, vector<4x128xf32>, vector<8x128xf32> -> vector<8x128xf32>
    %cst_17 = arith.constant dense<0.000000e+00> : vector<8x128xf32>
    %29 = tpu.matmul %28, %2, %cst_17 {dimension_numbers = #tpu.dot_dimension_numbers<[1], [0], [0], [1], [0, 0, 1, 1], [], []>} : vector<8x128xf32>, vector<128x128xf32>, vector<8x128xf32> -> vector<8x128xf32>
    %30 = vector.broadcast %3 : vector<1x128xf32> to vector<8x128xf32>
    %31 = arith.addf %29, %30 : vector<8x128xf32>
    %c0_18 = arith.constant 0 : index
    %c0_19 = arith.constant 0 : index
    %c0_20 = arith.constant 0 : index
    %32 = vector.load %arg3[%c0_18, %c0_19, %c0_20] : memref<2x8x128xf32, #tpu.memory_space<vmem>>, vector<1x8x128xf32>
    %33 = vector.shape_cast %32 : vector<1x8x128xf32> to vector<8x128xf32>
    %34 = vector.shape_cast %31 : vector<8x128xf32> to vector<1x8x128xf32>
    tpu.vector_store %arg3[%c0_18, %c0_19, %c0_20], %34 {strides = array<i32>} : memref<2x8x128xf32, #tpu.memory_space<vmem>>, vector<1x8x128xf32>,
    %35 = vector.extract_strided_slice %16 {offsets = [0, 4], sizes = [8, 4], strides = [1, 1]} : vector<8x8xf32> to vector<8x4xf32>
    %cst_21 = arith.constant dense<0xFF800000> : vector<8xf32>
    %36 = vector.multi_reduction <maximumf>, %35, %cst_21 [1] : vector<8x4xf32> to vector<8xf32>
    %37 = vector.shape_cast %36 : vector<8xf32> to vector<8x1xf32>
    %38 = vector.broadcast %37 : vector<8x1xf32> to vector<8x4xf32>
    %39 = arith.subf %35, %38 : vector<8x4xf32>
    %40 = math.exp %39 : vector<8x4xf32>
    %cst_22 = arith.constant dense<0.000000e+00> : vector<8xf32>
    %41 = vector.multi_reduction <add>, %40, %cst_22 [1] : vector<8x4xf32> to vector<8xf32>
    %42 = vector.shape_cast %41 : vector<8xf32> to vector<8x1xf32>
    %43 = vector.broadcast %42 : vector<8x1xf32> to vector<8x4xf32>
    %44 = arith.divf %40, %43 : vector<8x4xf32>
    %45 = vector.extract_strided_slice %8 {offsets = [4, 0], sizes = [4, 128], strides = [1, 1]} : vector<8x128xf32> to vector<4x128xf32>
    %cst_23 = arith.constant dense<0.000000e+00> : vector<8x128xf32>
    %46 = tpu.matmul %44, %45, %cst_23 {dimension_numbers = #tpu.dot_dimension_numbers<[1], [0], [0], [1], [0, 0, 1, 1], [], []>} : vector<8x4xf32>, vector<4x128xf32>, vector<8x128xf32> -> vector<8x128xf32>
    %cst_24 = arith.constant dense<0.000000e+00> : vector<8x128xf32>
    %47 = tpu.matmul %46, %2, %cst_24 {dimension_numbers = #tpu.dot_dimension_numbers<[1], [0], [0], [1], [0, 0, 1, 1], [], []>} : vector<8x128xf32>, vector<128x128xf32>, vector<8x128xf32> -> vector<8x128xf32>
    %48 = vector.broadcast %3 : vector<1x128xf32> to vector<8x128xf32>
    %49 = arith.addf %47, %48 : vector<8x128xf32>
    %c1 = arith.constant 1 : index
    %c0_25 = arith.constant 0 : index
    %c0_26 = arith.constant 0 : index
    %50 = vector.load %arg3[%c1, %c0_25, %c0_26] : memref<2x8x128xf32, #tpu.memory_space<vmem>>, vector<1x8x128xf32>
    %51 = vector.shape_cast %50 : vector<1x8x128xf32> to vector<8x128xf32>
    %52 = vector.shape_cast %49 : vector<8x128xf32> to vector<1x8x128xf32>
    tpu.vector_store %arg3[%c1, %c0_25, %c0_26], %52 {strides = array<i32>} : memref<2x8x128xf32, #tpu.memory_space<vmem>>, vector<1x8x128xf32>,
    return
  }
}

</mosaic_0001>

<bundles_post_ra>
// kernel: tpu_custom_call.1
= control target key start
LH: loop header
LB: loop body
LE: loop exit
PB: predicated region body
PF: predicated region fallthrough
CT: control target
= control target key end

     0   :  { %8 = vsyncpa [#allocation3], 0  ;;  %s1254_s0 = inlined_call_operand.hbm [shape: f32[8,128], index: 0, kind: input, shape index: {}]   ;;  %s1255_s1 = inlined_call_operand.hbm [shape: f32[8,128], index: 1, kind: input, shape index: {}]   ;;  %s1256_s2 = inlined_call_operand.hbm [shape: f32[400,128], index: 2, kind: input, shape index: {}]   ;;  %s1257_s3 = inlined_call_operand.hbm [shape: f32[2,8,128], index: 3, kind: output, shape index: {}]  }
   0x1   :  { %9 = vsyncpa [#allocation6], 0 }
   0x2   :  { %10 = vsyncpa [#allocation4], 0  ;;  %s1107_s12 = smov [#allocation5]   ;;  %s1108_s14 = smov [#allocation2]  }
   0x3   :  { %s27_s13 = sshll.u32 %s1107_s12, 4  ;;  %s17_s15 = sshll.u32 %s1108_s14, 4  ;;  %s28_s13 = int_to_ptr.vmem [resolvable:$true] %s27_s13  ;;  %s18_s15 = int_to_ptr.vmem [resolvable:$true] %s17_s15 }
   0x4   :  { %s1013_s18 = scalar_lea.hbm %s1255_s1, 128 }
   0x5   :  { %p1014_p0 = scmp.ne.s32.totalorder %s1255_s1, %s1013_s18  ;;  %p1017_p1 = scmp.lt.u32.totalorder %s1013_s18, %s1255_s1 }
   0x7   :  { %p1019_p2 = pnand %p1017_p1, %p1014_p0 }
   0x9   :  { %1022 = shalt.err (!%p1019_p2)
}
   0xa   :  { %s1023_s23 = scalar_lea.vmem %s28_s13, 128  ;;  %p1028_p4 = scmp.lt.s32.totalorder %s28_s13, %s28_s13 }
   0xb   :  { %p1024_p3 = scmp.ne.s32.totalorder %s28_s13, %s1023_s23  ;;  %p1029_p5 = scmp.lt.s32.totalorder %s1023_s23, %s1023_s23 }
   0xd   :  { %p1030_p6 = por %p1029_p5, %p1028_p4 }
   0xf   :  { %p1031_p7 = pnand %p1030_p6, %p1024_p3 }
  0x11   :  { %1034 = shalt.err (!%p1031_p7)
}
  0x12   :  { %30 = dma.hbm_to_vmem [thread:$0]  %s1255_s1, 128, %s28_s13, [#allocation6]  }
  0x13   :  { %s1035_s28 = scalar_lea.hbm %s1254_s0, 128 }
  0x14   :  { %p1036_p8 = scmp.ne.s32.totalorder %s1254_s0, %s1035_s28  ;;  %p1039_p9 = scmp.lt.u32.totalorder %s1035_s28, %s1254_s0 }
  0x16   :  { %p1041_p10 = pnand %p1039_p9, %p1036_p8 }
  0x18   :  { %1044 = shalt.err (!%p1041_p10)
}
  0x19   :  { %s1045_s6 = scalar_lea.vmem %s18_s15, 128  ;;  %p1050_p12 = scmp.lt.s32.totalorder %s18_s15, %s18_s15 }
  0x1a   :  { %p1046_p11 = scmp.ne.s32.totalorder %s18_s15, %s1045_s6  ;;  %p1051_p13 = scmp.lt.s32.totalorder %s1045_s6, %s1045_s6 }
  0x1c   :  { %p1052_p0 = por %p1051_p13, %p1050_p12 }
  0x1e   :  { %p1053_p1 = pnand %p1052_p0, %p1046_p11 }
  0x20   :  { %1056 = shalt.err (!%p1053_p1)
}
  0x21   :  { %20 = dma.hbm_to_vmem [thread:$0]  %s1254_s0, 128, %s18_s15, [#allocation3]  }
  0x22   :  { %s1109_s8 = smov [#allocation7]   ;;  %s1057_s12 = scalar_lea.hbm %s1256_s2, 6400 }
  0x23   :  { %s36_s9 = sshll.u32 %s1109_s8, 4  ;;  %p1058_p2 = scmp.ne.s32.totalorder %s1256_s2, %s1057_s12  ;;  %s37_s9 = int_to_ptr.vmem [resolvable:$true] %s36_s9 }
  0x24   :  { %p1061_p3 = scmp.lt.u32.totalorder %s1057_s12, %s1256_s2 }
  0x26   :  { %p1063_p4 = pnand %p1061_p3, %p1058_p2 }
  0x28   :  { %1066 = shalt.err (!%p1063_p4)
}
  0x29   :  { %s1067_s18 = scalar_lea.vmem %s37_s9, 6400  ;;  %p1072_p6 = scmp.lt.s32.totalorder %s37_s9, %s37_s9 }
  0x2a   :  { %p1068_p5 = scmp.ne.s32.totalorder %s37_s9, %s1067_s18  ;;  %p1073_p7 = scmp.lt.s32.totalorder %s1067_s18, %s1067_s18 }
  0x2c   :  { %p1074_p8 = por %p1073_p7, %p1072_p6 }
  0x2e   :  { %p1075_p9 = pnand %p1074_p8, %p1068_p5 }
  0x30   :  { %1078 = shalt.err (!%p1075_p9)
}
  0x31   :  { %s1110_s0 = smov 128   ;;  %s1111_s15 = smov 8  }
  0x32   :  { %42 = dma.hbm_to_vmem [thread:$0]  %s1256_s2, 6400, %s37_s9, [#allocation6], %s1110_s0, %s1110_s0, %s1111_s15  }
  0x33   :  { %1101 = dma.done.wait [#allocation3], 128  }
  0x34   :  { %1102 = vsyncadd [#allocation3], 4294967168 }
  0x35   :  { %1103 = dma.done.wait [#allocation6], 6528  }
  0x36   :  { %1104 = vsyncadd [#allocation6], 4294960768  ;;  %v1112_v0 = vmov 0.0|0.0   ;;  %vm1113_vm0 = vmmov 0   ;;  %v1114_v1 = vmov 0.0   ;;  %v68_v2 = vld [vmem:[#allocation7 + $0x80] sm:$0xff] }
  0x37   :  { %923 = vmatprep.subr.bf16.mxu1 %v1112_v0  ;;  %899 = vmatprep.subr.bf16.mxu0 %v1112_v0  ;;  %v69_v3 = vld [vmem:[#allocation7 + $0x88] sm:$0xff]  ;;  %v52_v4 = vld [vmem:[#allocation7] sm:$0xff]  ;;  %v70_v7 = vld [vmem:[#allocation7 + $0x90] sm:$0xff]  ;;  %vm332_vm1 = vcmask 1043456   ;;  %vm481_vm3 = vcmask 64544   ;;  %vm317_vm4 = vcmask 31744  }
  0x38   :  { %811 = vmatprep.mubr.msk.f32.mxu1 %vm1113_vm0, %v1114_v1  ;;  %776 = vmatprep.mubr.msk.f32.mxu0 %vm1113_vm0, %v1114_v1  ;;  %v924_v5 = vpack.c.bf16 %v69_v3, %v68_v2  ;;  %v53_v6 = vld [vmem:[#allocation7 + $0x8] sm:$0xff]  ;;  %v71_v8 = vld [vmem:[#allocation7 + $0x98] sm:$0xff]  ;;  %v54_v10 = vld [vmem:[#allocation7 + $0x10] sm:$0xff]  ;;  %s1115_s2 = smov 124   ;;  %s1116_s21 = smov [#allocation8]  }
  0x39   :  { %v900_v9 = vpack.c.bf16 %v53_v6, %v52_v4  ;;  %v55_v11 = vld [vmem:[#allocation7 + $0x18] sm:$0xff]  ;;  %v927_v12 = vpack.c.bf16 %v71_v8, %v70_v7  ;;  %v72_v14 = vld [vmem:[#allocation7 + $0xa0] sm:$0xff]  ;;  %v73_v15 = vld [vmem:[#allocation7 + $0xa8] sm:$0xff]  ;;  %s652_s22 = sshll.u32 %s1116_s21, 4  ;;  %s653_s22 = int_to_ptr.vmem [resolvable:$true] %s652_s22 }
  0x3a   :  { %925 = vmatpush3.bf16.msra.mxu1 %v924_v5  ;;  %v903_v13 = vpack.c.bf16 %v55_v11, %v54_v10  ;;  %v56_v16 = vld [vmem:[#allocation7 + $0x20] sm:$0xff]  ;;  %v57_v17 = vld [vmem:[#allocation7 + $0x28] sm:$0xff]  ;;  %v930_v18 = vpack.c.bf16 %v73_v15, %v72_v14  ;;  %v74_v20 = vld [vmem:[#allocation7 + $0xb0] sm:$0xff]  ;;  %s1079_s23 = scalar_lea.vmem %s653_s22, 256  ;;  %p1084_p11 = scmp.lt.s32.totalorder %s653_s22, %s653_s22 }
  0x3b   :  { %901 = vmatpush3.bf16.msra.mxu0 %v900_v9  ;;  %926 = vmatprep.subr.bf16.mxu1 %v1112_v0  ;;  %v906_v19 = vpack.c.bf16 %v57_v17, %v56_v16  ;;  %v75_v21 = vld [vmem:[#allocation7 + $0xb8] sm:$0xff]  ;;  %v58_v22 = vld [vmem:[#allocation7 + $0x30] sm:$0xff]  ;;  %v76_v26 = vld [vmem:[#allocation7 + $0xc0] sm:$0xff]  ;;  %p1080_p10 = scmp.ne.s32.totalorder %s653_s22, %s1079_s23  ;;  %p1085_p12 = scmp.lt.s32.totalorder %s1079_s23, %s1079_s23 }
  0x3c   :  { %902 = vmatprep.subr.bf16.mxu0 %v1112_v0  ;;  %v59_v23 = vld [vmem:[#allocation7 + $0x38] sm:$0xff]  ;;  %v933_v24 = vpack.c.bf16 %v75_v21, %v74_v20  ;;  %v77_v27 = vld [vmem:[#allocation7 + $0xc8] sm:$0xff]  ;;  %v60_v28 = vld [vmem:[#allocation7 + $0x40] sm:$0xff] }
  0x3d   :  { %v909_v25 = vpack.c.bf16 %v59_v23, %v58_v22  ;;  %v61_v29 = vld [vmem:[#allocation7 + $0x48] sm:$0xff]  ;;  %v936_v30 = vpack.c.bf16 %v77_v27, %v76_v26  ;;  %v78_v32 = vld [vmem:[#allocation7 + $0xd0] sm:$0xff]  ;;  %v79_v33 = vld [vmem:[#allocation7 + $0xd8] sm:$0xff]  ;;  %p1086_p13 = por %p1085_p12, %p1084_p11 }
  0x3e   :  { %928 = vmatpush3.bf16.msra.mxu1 %v927_v12  ;;  %v912_v31 = vpack.c.bf16 %v61_v29, %v60_v28  ;;  %v62_v34 = vld [vmem:[#allocation7 + $0x50] sm:$0xff]  ;;  %v63_v35 = vld [vmem:[#allocation7 + $0x58] sm:$0xff]  ;;  %v939_v36 = vpack.c.bf16 %v79_v33, %v78_v32  ;;  %v80_v38 = vld [vmem:[#allocation7 + $0xe0] sm:$0xff] }
  0x3f   :  { %904 = vmatpush3.bf16.msra.mxu0 %v903_v13  ;;  %929 = vmatprep.subr.bf16.mxu1 %v1112_v0  ;;  %v915_v37 = vpack.c.bf16 %v63_v35, %v62_v34  ;;  %v81_v39 = vld [vmem:[#allocation7 + $0xe8] sm:$0xff]  ;;  %v64_v40 = vld [vmem:[#allocation7 + $0x60] sm:$0xff]  ;;  %v82_v44 = vld [vmem:[#allocation7 + $0xf0] sm:$0xff]  ;;  %p1087_p0 = pnand %p1086_p13, %p1080_p10 }
  0x40   :  { %905 = vmatprep.subr.bf16.mxu0 %v1112_v0  ;;  %v65_v41 = vld [vmem:[#allocation7 + $0x68] sm:$0xff]  ;;  %v942_v42 = vpack.c.bf16 %v81_v39, %v80_v38  ;;  %v83_v45 = vld [vmem:[#allocation7 + $0xf8] sm:$0xff]  ;;  %v66_v46 = vld [vmem:[#allocation7 + $0x70] sm:$0xff] }
  0x41   :  { %v918_v43 = vpack.c.bf16 %v65_v41, %v64_v40  ;;  %v67_v47 = vld [vmem:[#allocation7 + $0x78] sm:$0xff]  ;;  %v945_v48 = vpack.c.bf16 %v83_v45, %v82_v44  ;;  %v102_v51 = vld [vmem:[#allocation2] sm:$0xff]  ;;  %v101_v56 = vld [vmem:[#allocation7 + $0x180] sm:$0xff] }
  0x42   :  { %931 = vmatpush3.bf16.msra.mxu1 %v930_v18  ;;  %v921_v49 = vpack.c.bf16 %v67_v47, %v66_v46  ;;  %v173_v50 = vld [vmem:[#allocation5] sm:$0xff]  ;;  %vm314_vm2 = vcmp.eq.f32.partialorder %v101_v56, 0.0  ;;  %v84_v13 = vld [vmem:[#allocation7 + $0x100] sm:$0xff]  ;;  %v85_v14 = vld [vmem:[#allocation7 + $0x108] sm:$0xff] }
  0x43   :  { %907 = vmatpush3.bf16.msra.mxu0 %v906_v19  ;;  %932 = vmatprep.subr.bf16.mxu1 %v1112_v0  ;;  %v86_v15 = vld [vmem:[#allocation7 + $0x110] sm:$0xff]  ;;  %v948_v16 = vpack.c.bf16 %v85_v14, %v84_v13  ;;  %v87_v17 = vld [vmem:[#allocation7 + $0x118] sm:$0xff]  ;;  %v88_v20 = vld [vmem:[#allocation7 + $0x120] sm:$0xff] }
  0x44   :  { %908 = vmatprep.subr.bf16.mxu0 %v1112_v0  ;;  %v951_v19 = vpack.c.bf16 %v87_v17, %v86_v15  ;;  %v89_v21 = vld [vmem:[#allocation7 + $0x128] sm:$0xff]  ;;  %v90_v23 = vld [vmem:[#allocation7 + $0x130] sm:$0xff]  ;;  %v92_v28 = vld [vmem:[#allocation7 + $0x140] sm:$0xff] }
  0x45   :  { %v954_v22 = vpack.c.bf16 %v89_v21, %v88_v20  ;;  %v93_v29 = vld [vmem:[#allocation7 + $0x148] sm:$0xff]  ;;  %v94_v34 = vld [vmem:[#allocation7 + $0x150] sm:$0xff]  ;;  %v95_v35 = vld [vmem:[#allocation7 + $0x158] sm:$0xff] }
  0x46   :  { %934 = vmatpush3.bf16.msra.mxu1 %v933_v24  ;;  %v91_v24 = vld [vmem:[#allocation7 + $0x138] sm:$0xff]  ;;  %v960_v32 = vpack.c.bf16 %v93_v29, %v92_v28  ;;  %v97_v38 = vld [vmem:[#allocation7 + $0x168] sm:$0xff]  ;;  %v98_v40 = vld [vmem:[#allocation7 + $0x170] sm:$0xff] }
  0x47   :  { %910 = vmatpush3.bf16.msra.mxu0 %v909_v25  ;;  %935 = vmatprep.subr.bf16.mxu1 %v1112_v0  ;;  %v957_v27 = vpack.c.bf16 %v91_v24, %v90_v23  ;;  %v99_v41 = vld [vmem:[#allocation7 + $0x178] sm:$0xff]  ;;  %v667_v47 = vld [vmem:[#allocation7 + $0x188] ss:$0 sm:$0xff] }
  0x48   :  { %911 = vmatprep.subr.bf16.mxu0 %v1112_v0 }
  0x4a   :  { %937 = vmatpush3.bf16.msra.mxu1 %v936_v30 }
  0x4b   :  { %913 = vmatpush3.bf16.msra.mxu0 %v912_v31  ;;  %938 = vmatprep.subr.bf16.mxu1 %v1112_v0 }
  0x4c   :  { %914 = vmatprep.subr.bf16.mxu0 %v1112_v0 }
  0x4e   :  { %940 = vmatpush3.bf16.msra.mxu1 %v939_v36  ;;  %v963_v36 = vpack.c.bf16 %v95_v35, %v94_v34 }
  0x4f   :  { %916 = vmatpush3.bf16.msra.mxu0 %v915_v37  ;;  %941 = vmatprep.subr.bf16.mxu1 %v1112_v0  ;;  %v96_v37 = vld [vmem:[#allocation7 + $0x160] sm:$0xff] }
  0x50   :  { %917 = vmatprep.subr.bf16.mxu0 %v1112_v0  ;;  %v966_v39 = vpack.c.bf16 %v97_v38, %v96_v37 }
  0x52   :  { %943 = vmatpush3.bf16.msra.mxu1 %v942_v42  ;;  %v969_v42 = vpack.c.bf16 %v99_v41, %v98_v40 }
  0x53   :  { %919 = vmatpush3.bf16.msra.mxu0 %v918_v43  ;;  %944 = vmatprep.subr.bf16.mxu1 %v1112_v0 }
  0x54   :  { %920 = vmatprep.subr.bf16.mxu0 %v1112_v0 }
  0x56   :  { %946 = vmatpush3.bf16.msra.mxu1 %v945_v48 }
  0x57   :  { %922 = vmatpush3.bf16.msra.mxu0 %v921_v49  ;;  %819 = vmatprep.subr.mxu1 %v1114_v1 }
  0x58   :  { %814 = vmatprep.subr.mxu0 %v1114_v1 }
  0x59   :  { %812 = vmatmul.mubr.f32.vlgmr.msra.gmra.mrb[0].mxu1 %v173_v50 }
  0x5a   :  { %777 = vmatmul.mubr.f32.vlgmr.msra.gmra.mrb[0].mxu0 %v102_v51  ;;  %821 = vmatprep.mubr.msk.f32.mxu1 %vm1113_vm0, %v1114_v1 }
  0x5b   :  { %816 = vmatprep.mubr.msk.f32.mxu0 %vm1113_vm0, %v1114_v1 }
 0x12c   :  { %v1202_v52 = vpop.f32.mrb[0].mxu1 }
 0x12d   :  { %v813_v53 = vpop.f32.mrb[1].mxu1  ;;  %815 = vmatpush3.xpose.msra.mxu0 %v1202_v52  ;;  %820 = vmatpush3.msk.msra.mxu1 %vm332_vm1, %v1202_v52  ;;  %v169_v54 = vpop.f32.mrb[0].mxu0  ;;  %v500_v33 = vrot.slane %v1202_v52, 4 }
 0x12e   :  { %v778_v55 = vpop.f32.mrb[1].mxu0  ;;  %859 = vmatprep.subr.mxu1 %v1114_v1  ;;  %947 = vmatprep.subr.bf16.mxu0 %v1112_v0 }
 0x130   :  { %817 = vmatmul.mubr.f32.vlgmr.msra.gmra.mrb[2].mxu0 %v169_v54 }
 0x131   :  { %856 = vmatprep.mubr.msk.f32.mxu0 %vm1113_vm0, %v1114_v1  ;;  %949 = vmatpush3.bf16.msra.mxu0 %v948_v16 }
 0x132   :  { %950 = vmatprep.subr.bf16.mxu0 %v1112_v0 }
 0x135   :  { %952 = vmatpush3.bf16.msra.mxu0 %v951_v19 }
 0x136   :  { %953 = vmatprep.subr.bf16.mxu0 %v1112_v0 }
 0x139   :  { %955 = vmatpush3.bf16.msra.mxu0 %v954_v22 }
 0x13a   :  { %956 = vmatprep.subr.bf16.mxu0 %v1112_v0 }
 0x13d   :  { %958 = vmatpush3.bf16.msra.mxu0 %v957_v27 }
 0x13e   :  { %959 = vmatprep.subr.bf16.mxu0 %v1112_v0 }
 0x141   :  { %961 = vmatpush3.bf16.msra.mxu0 %v960_v32 }
 0x142   :  { %962 = vmatprep.subr.bf16.mxu0 %v1112_v0 }
 0x145   :  { %964 = vmatpush3.bf16.msra.mxu0 %v963_v36 }
 0x146   :  { %965 = vmatprep.subr.bf16.mxu0 %v1112_v0 }
 0x149   :  { %967 = vmatpush3.bf16.msra.mxu0 %v966_v39 }
 0x14a   :  { %968 = vmatprep.subr.bf16.mxu0 %v1112_v0 }
 0x14d   :  { %970 = vmatpush3.bf16.msra.mxu0 %v969_v42 }
 0x203   :  { %v310_v57 = vpop.f32.mrb[2].mxu0 }
 0x204   :  { %v315_v58 = vsel %vm314_vm2, -1e+20, %v310_v57  ;;  %v818_v59 = vpop.f32.mrb[3].mxu0 }
 0x205   :  { %v316_v60 = vmul.f32 0.5, %v315_v58 }
 0x207   :  { %v482_v61 = vsel %vm481_vm3, %v316_v60, -inf  ;;  %v318_v62 = vsel %vm317_vm4, %v316_v60, -inf }
 0x208   :  { %483 = vmax.xlane.f32.xlu0 %v482_v61  ;;  %319 = vmax.xlane.f32.xlu1 %v318_v62 }
 0x295   :  { %v484_v63 = vpop.xlane.xlu0 %483  ;;  %v320_v5 = vpop.xlane.xlu1 %319 }
 0x296   :  { %v485_v2 = vsub.f32 %v316_v60, %v484_v63  ;;  %v321_v6 = vsub.f32 %v316_v60, %v320_v5 }
 0x298   :  { %v486_v3 = vmul.f32 1.442695, %v485_v2  ;;  %v322_v7 = vmul.f32 1.442695, %v321_v6 }
 0x29a   :  { %1005 = vpow2.f32 %v486_v3 }
 0x29b   :  { %1007 = vpow2.f32 %v322_v7 }
 0x2a4   :  { %v1006_v4 = vpop.eup %1005 }
 0x2a5   :  { %489 = vrot.lane.b32.xlu0 %v1006_v4, %s1115_s2  ;;  %v1008_v10 = vpop.eup %1007 }
 0x2a6   :  { %v324_v11 = vsel %vm317_vm4, %v1008_v10, 0.0 }
 0x317   :  { %v490_v8 = vpop.permute.xlu0 %489 }
 0x318   :  { %v492_v9 = vsel %vm317_vm4, %v490_v8, 0.0 }
 0x319   :  { %493 = vadd.xlane.f32.xlu1 %v492_v9 }
 0x31d   :  { %325 = vadd.xlane.f32.xlu1 %v324_v11 }
 0x3a6   :  { %v494_v12 = vpop.xlane.xlu1 %493 }
 0x3a7   :  { %1009 = vrcp.f32 %v494_v12 }
 0x3aa   :  { %v326_v18 = vpop.xlane.xlu1 %325 }
 0x3ab   :  { %1011 = vrcp.f32 %v326_v18 }
 0x3b1   :  { %v1010_v25 = vpop.eup %1009 }
 0x3b2   :  { %v496_v26 = vmul.f32 %v1010_v25, %v1006_v4 }
 0x3b4   :  { %498 = vrot.lane.b32.xlu1 %v496_v26, %s1115_s2 }
 0x3b5   :  { %v1012_v30 = vpop.eup %1011 }
 0x3b6   :  { %v328_v31 = vmul.f32 %v1012_v30, %v1008_v10 }
 0x3b8   :  { %822 = vmatmul.mubr.msk.f32.vlgmr.msra.gmra.mrb[2].mxu1 %vm317_vm4, %v328_v31 }
 0x3b9   :  { %860 = vmatpush3.msk.msra.mxu1 %vm332_vm1, %v500_v33  ;;  %861 = vmatprep.mubr.msk.f32.mxu1 %vm1113_vm0, %v1114_v1 }
 0x3ba   :  { %971 = vmatprep.subr.bf16.mxu1 %v1112_v0 }
 0x426   :  { %v499_v43 = vpop.permute.xlu1 %498 }
 0x427   :  { %862 = vmatmul.mubr.msk.f32.vlgmr.msra.gmra.mrb[4].mxu1 %vm317_vm4, %v499_v43 }
 0x428   :  { %973 = vmatpush3.bf16.msra.mxu1 %v948_v16  ;;  %896 = vmatprep.mubr.msk.f32.mxu1 %vm1113_vm0, %v1114_v1 }
 0x429   :  { %974 = vmatprep.subr.bf16.mxu1 %v1112_v0 }
 0x42c   :  { %976 = vmatpush3.bf16.msra.mxu1 %v951_v19 }
 0x42d   :  { %977 = vmatprep.subr.bf16.mxu1 %v1112_v0 }
 0x430   :  { %979 = vmatpush3.bf16.msra.mxu1 %v954_v22 }
 0x431   :  { %980 = vmatprep.subr.bf16.mxu1 %v1112_v0 }
 0x434   :  { %982 = vmatpush3.bf16.msra.mxu1 %v957_v27 }
 0x435   :  { %983 = vmatprep.subr.bf16.mxu1 %v1112_v0 }
 0x438   :  { %985 = vmatpush3.bf16.msra.mxu1 %v960_v32 }
 0x439   :  { %986 = vmatprep.subr.bf16.mxu1 %v1112_v0 }
 0x43c   :  { %988 = vmatpush3.bf16.msra.mxu1 %v963_v36 }
 0x43d   :  { %989 = vmatprep.subr.bf16.mxu1 %v1112_v0 }
 0x440   :  { %991 = vmatpush3.bf16.msra.mxu1 %v966_v39 }
 0x441   :  { %992 = vmatprep.subr.bf16.mxu1 %v1112_v0 }
 0x444   :  { %994 = vmatpush3.bf16.msra.mxu1 %v969_v42 }
 0x48b   :  { %v402_v1 = vpop.f32.mrb[2].mxu1 }
 0x48c   :  { %v823_v44 = vpop.f32.mrb[3].mxu1  ;;  %857 = vmatmul.mubr.f32.vlgmr.msra.gmra.mrb[4].mxu0 %v402_v1 }
 0x4fa   :  { %v571_v45 = vpop.f32.mrb[4].mxu1 }
 0x4fb   :  { %v863_v46 = vpop.f32.mrb[5].mxu1  ;;  %897 = vmatmul.mubr.f32.vlgmr.msra.gmra.mrb[6].mxu1 %v571_v45 }
 0x55f   :  { %v476_v48 = vpop.f32.mrb[4].mxu0 }
 0x560   :  { %v477_v49 = vadd.f32 %v667_v47, %v476_v48  ;;  %v858_v50 = vpop.f32.mrb[5].mxu0 }
 0x562   :  { %480 = vst [vmem:[#allocation8] sm:$0xff] %v477_v49 }
 0x5ce   :  { %v641_v51 = vpop.f32.mrb[6].mxu1 }
 0x5cf   :  { %v642_v52 = vadd.f32 %v667_v47, %v641_v51  ;;  %v898_v53 = vpop.f32.mrb[7].mxu1 }
 0x5d1   :  { %646 = vst [vmem:[#allocation8 + $0x8] sm:$0xff] %v642_v52 }
 0x5d2   :  { %1090 = shalt.err (!%p1087_p0)
}
 0x5d3   :  { %s1091_s26 = scalar_lea.hbm %s1257_s3, 256 }
 0x5d4   :  { %p1092_p1 = scmp.ne.s32.totalorder %s1257_s3, %s1091_s26  ;;  %p1095_p2 = scmp.lt.u32.totalorder %s1091_s26, %s1257_s3 }
 0x5d6   :  { %p1097_p3 = pnand %p1095_p2, %p1092_p1 }
 0x5d8   :  { %1100 = shalt.err (!%p1097_p3)
}
 0x5d9   :  { %658 = dma.vmem_to_hbm [thread:$0]  %s653_s22, 256, %s1257_s3, [#allocation4], %s1110_s0, %s1110_s0, %s1111_s15  }
 0x5da   :  { %1105 = dma.done.wait [#allocation4], 256  }
 0x5db   :  { %1106 = vsyncadd [#allocation4], 4294967040 }
 0x5dc   :  { %662 = vsyncpa [#allocation3], 1 }
 0x5dd   :  { %663 = vsyncpa [#allocation6], 1 }
 0x5de   :  { %664 = vsyncpa [#allocation4], 1 }

</bundles_post_ra>
